<compile_context>
chip_gen: v6e
topology: v6e:2x2x1
jax: 0.10.0
libtpu: 0.0.40
codegen_flags: <defaults>
</compile_context>

<pallas_src>
import jax
import jax.numpy as jnp
from jax.experimental import pallas as pl
from jax.experimental.pallas import tpu as pltpu

ALPHA = 0.3   # module default
GAMMA = 1     # module default
# TODO(synk): optional per-class `weight` tensor of F.cross_entropy is not
# implemented (module default is weight=None, so it is unused here).
# NOTE: for vocab-scale C (>~16k) a second "arbitrary" grid axis over C with an
# online LSE would be needed; not implemented since C here is classifier-sized.


def _focal_loss_kernel(logits_ref, target_ref, out_ref):
    x = logits_ref[...].astype(jnp.float32)        # (TILE_N, C)
    tgt = target_ref[...]                          # (TILE_N, 1) int32
    tn, c = x.shape

    # pick the target logit via a lane iota (no one-hot materialization)
    class_ids = jax.lax.broadcasted_iota(jnp.int32, (tn, c), 1)
    picked = jnp.sum(jnp.where(class_ids == tgt, x, 0.0),
                     axis=1, keepdims=True)                        # (TILE_N, 1)

    # numerically stable log-sum-exp along the class (lane) axis
    m = jnp.max(x, axis=1, keepdims=True)                          # (TILE_N, 1)
    lse = m + jnp.log(jnp.sum(jnp.exp(x - m), axis=1, keepdims=True))

    ce = lse - picked                                              # (TILE_N, 1)
    pt = jnp.exp(-ce)
    focal = jnp.float32(ALPHA) * (1.0 - pt) ** GAMMA * ce
    out_ref[...] = focal


def _choose_tile_n(n, c):
    # Keep the two double-buffered logits DMA tiles within ~6 MiB so the kernel
    # fits every generation's default scoped VMEM (v5e 16 MiB, v6e/v7x 32 MiB,
    # v7x physical 64 MiB) with room for compute temporaries.
    budget_bytes = 6 * 1024 * 1024
    tile = budget_bytes // (2 * c * 4)
    tile = int(max(8, min(1024, tile)))
    tile -= tile % 8
    # never tile beyond the (8-padded) batch
    n_pad8 = ((n + 7) // 8) * 8
    tile = min(tile, n_pad8)
    return max(8, tile)


def focal_loss(logits, targets, *, reduction="mean", tile_n=None):
    """logits: (N, C) float, targets: (N,) int -> scalar (mean/sum) or (N,) f32."""
    n, c = logits.shape
    if tile_n is None:
        tile_n = _choose_tile_n(n, c)
    tile_n = max(8, (tile_n // 8) * 8)

    num_tiles = pl.cdiv(n, tile_n)
    n_pad = num_tiles * tile_n
    pad = n_pad - n

    logits_p = jnp.pad(logits, ((0, pad), (0, 0))) if pad else logits
    targets_p = jnp.pad(targets.astype(jnp.int32), ((0, pad),)) if pad \
        else targets.astype(jnp.int32)
    targets_p = targets_p.reshape(n_pad, 1)

    per_sample = pl.pallas_call(
        _focal_loss_kernel,
        out_shape=jax.ShapeDtypeStruct((n_pad, 1), jnp.float32),
        grid=(num_tiles,),
        in_specs=[
            pl.BlockSpec((tile_n, c), lambda i: (i, 0)),
            pl.BlockSpec((tile_n, 1), lambda i: (i, 0)),
        ],
        out_specs=pl.BlockSpec((tile_n, 1), lambda i: (i, 0)),
        compiler_params=pltpu.CompilerParams(
            dimension_semantics=("parallel",),
            vmem_limit_bytes=32 * 1024 * 1024,
        ),
    )(logits_p, targets_p)

    focal = per_sample[:n, 0]   # drop padded rows before reducing
    if reduction == "mean":
        return jnp.mean(focal)
    if reduction == "sum":
        return jnp.sum(focal)
    return focal


def _reference(logits, targets, reduction="mean"):
    # pure-JAX reference of the same math (for correctness check)
    logp = jax.nn.log_softmax(logits.astype(jnp.float32), axis=-1)
    ce = -jnp.take_along_axis(logp, targets[:, None], axis=-1)[:, 0]
    pt = jnp.exp(-ce)
    focal = ALPHA * (1.0 - pt) ** GAMMA * ce
    if reduction == "mean":
        return jnp.mean(focal)
    if reduction == "sum":
        return jnp.sum(focal)
    return focal


if __name__ == "__main__":
    key = jax.random.PRNGKey(0)
    k1, k2, k3, k4 = jax.random.split(key, 4)

    # small classification-head shapes
    N, C = 8, 16
    logits = jax.random.normal(k1, (N, C), dtype=jnp.float32)
    targets = jax.random.randint(k2, (N,), 0, C, dtype=jnp.int32)

    out = jax.block_until_ready(focal_loss(logits, targets))
    ref = _reference(logits, targets)
    assert jnp.allclose(out, ref, atol=1e-5, rtol=1e-5), (out, ref)

    # non-multiple-of-tile batch with a forced small tile: exercises padding,
    # multi-tile grid, and the "parallel" grid axis
    N2, C2 = 37, 24
    logits2 = jax.random.normal(k3, (N2, C2), dtype=jnp.float32)
    targets2 = jax.random.randint(k4, (N2,), 0, C2, dtype=jnp.int32)
    out2 = jax.block_until_ready(focal_loss(logits2, targets2, tile_n=16))
    ref2 = _reference(logits2, targets2)
    assert jnp.allclose(out2, ref2, atol=1e-5, rtol=1e-5), (out2, ref2)

    print("KERNEL_OK")
</pallas_src>

<mosaic_0001>
module attributes {stable_mosaic.version = 11 : i64} {
  func.func @_focal_loss_kernel(%arg0: i32, %arg1: memref<8x16xf32, #tpu.memory_space<vmem>>, %arg2: memref<8x1xi32, #tpu.memory_space<vmem>>, %arg3: memref<8x1xf32, #tpu.memory_space<vmem>>) attributes {dimension_semantics = [#tpu.dimension_semantics<parallel>], iteration_bounds = array<i64: 1>, scalar_prefetch = 0 : i64, scratch_operands = 0 : i64, tpu.core_type = #tpu.core_type<tc>, window_params = [{transform_indices = @transform_0, window_bounds = array<i64: 8, 16>}, {transform_indices = @transform_1, window_bounds = array<i64: 8, 1>}, {transform_indices = @transform_2, window_bounds = array<i64: 8, 1>}]} {
    %c0 = arith.constant 0 : index
    %c0_0 = arith.constant 0 : index
    %0 = vector.load %arg1[%c0, %c0_0] : memref<8x16xf32, #tpu.memory_space<vmem>>, vector<8x16xf32>
    %c0_1 = arith.constant 0 : index
    %c0_2 = arith.constant 0 : index
    %1 = vector.load %arg2[%c0_1, %c0_2] : memref<8x1xi32, #tpu.memory_space<vmem>>, vector<8x1xi32>
    %2 = tpu.iota {dimensions = array<i32: 1>} : vector<8x16xi32>
    %3 = vector.broadcast %1 : vector<8x1xi32> to vector<8x16xi32>
    %4 = arith.cmpi eq, %2, %3 : vector<8x16xi32>
    %cst = arith.constant 0.000000e+00 : f32
    %5 = vector.broadcast %cst : f32 to vector<8x16xf32>
    %6 = arith.select %4, %0, %5 : vector<8x16xi1>, vector<8x16xf32>
    %cst_3 = arith.constant dense<0.000000e+00> : vector<8xf32>
    %7 = vector.multi_reduction <add>, %6, %cst_3 [1] : vector<8x16xf32> to vector<8xf32>
    %8 = vector.shape_cast %7 : vector<8xf32> to vector<8x1xf32>
    %cst_4 = arith.constant dense<0xFF800000> : vector<8xf32>
    %9 = vector.multi_reduction <maximumf>, %0, %cst_4 [1] : vector<8x16xf32> to vector<8xf32>
    %10 = vector.shape_cast %9 : vector<8xf32> to vector<8x1xf32>
    %11 = vector.broadcast %10 : vector<8x1xf32> to vector<8x16xf32>
    %12 = arith.subf %0, %11 : vector<8x16xf32>
    %13 = math.exp %12 : vector<8x16xf32>
    %cst_5 = arith.constant dense<0.000000e+00> : vector<8xf32>
    %14 = vector.multi_reduction <add>, %13, %cst_5 [1] : vector<8x16xf32> to vector<8xf32>
    %15 = vector.shape_cast %14 : vector<8xf32> to vector<8x1xf32>
    %16 = math.log %15 : vector<8x1xf32>
    %17 = arith.addf %10, %16 : vector<8x1xf32>
    %18 = arith.subf %17, %8 : vector<8x1xf32>
    %cst_6 = arith.constant 0.000000e+00 : f32
    %19 = vector.broadcast %cst_6 : f32 to vector<8x1xf32>
    %20 = arith.subf %19, %18 : vector<8x1xf32>
    %21 = math.exp %20 : vector<8x1xf32>
    %cst_7 = arith.constant 1.000000e+00 : f32
    %22 = vector.broadcast %cst_7 : f32 to vector<8x1xf32>
    %23 = arith.subf %22, %21 : vector<8x1xf32>
    %cst_8 = arith.constant 3.000000e-01 : f32
    %24 = vector.broadcast %cst_8 : f32 to vector<8x1xf32>
    %25 = arith.mulf %24, %23 : vector<8x1xf32>
    %26 = arith.mulf %25, %18 : vector<8x1xf32>
    %c0_9 = arith.constant 0 : index
    %c0_10 = arith.constant 0 : index
    %27 = vector.load %arg3[%c0_9, %c0_10] : memref<8x1xf32, #tpu.memory_space<vmem>>, vector<8x1xf32>
    tpu.vector_store %arg3[%c0_9, %c0_10], %26 {strides = array<i32>} : memref<8x1xf32, #tpu.memory_space<vmem>>, vector<8x1xf32>,
    return
  }
  func.func @transform_0(%arg0: i32) -> (i32, i32) {
    %c0_i32 = arith.constant 0 : i32
    %c0_i32_0 = arith.constant 0 : i32
    return %arg0, %c0_i32 : i32, i32
  }
  func.func @transform_1(%arg0: i32) -> (i32, i32) {
    %c0_i32 = arith.constant 0 : i32
    %c0_i32_0 = arith.constant 0 : i32
    return %arg0, %c0_i32 : i32, i32
  }
  func.func @transform_2(%arg0: i32) -> (i32, i32) {
    %c0_i32 = arith.constant 0 : i32
    %c0_i32_0 = arith.constant 0 : i32
    return %arg0, %c0_i32 : i32, i32
  }
}

</mosaic_0001>

<bundles_post_ra>
// kernel: tpu_custom_call.1
= control target key start
LH: loop header
LB: loop body
LE: loop exit
PB: predicated region body
PF: predicated region fallthrough
CT: control target
= control target key end

     0   :  { %vm20_vm0 = vcmask 130048   ;;  %v57_v1 = vmov 0   ;;  %v13_v7 = vlaneseq  ;;  %vm43_vm2 = vcmask 7168   ;;  %s85_s0 = inlined_call_operand.vmem [shape: f32[8,16], index: 0, kind: input, shape index: {}]   ;;  %s86_s1 = inlined_call_operand.vmem [shape: s32[8,1], index: 1, kind: input, shape index: {}]   ;;  %s87_s2 = inlined_call_operand.vmem [shape: f32[8,1], index: 2, kind: output, shape index: {}]  }
   0x1   :  { %v11_v0 = vld [vmem:[%s85_s0] sm:$0xff]  ;;  %50 = vset.pattern.permute.xlu0 %v57_v1 }
   0x2   :  { %v24_v2 = vsel %vm20_vm0, %v11_v0, -inf  ;;  %v12_v3 = vld [vmem:[%s86_s1] sm:$0xff]  ;;  %v14_v8 = vand.u32 127, %v13_v7 }
   0x3   :  { %25 = vmax.xlane.f32.xlu0 %v24_v2 }
  0x19   :  { %16 = vperm.xlu0 %50, %v12_v3  }
  0x8c   :  { %v26_v4 = vpop.xlane.xlu0 %25 }
  0x8d   :  { %v27_v5 = vsub.f32 %v11_v0, %v26_v4 }
  0x8f   :  { %v28_v6 = vmul.f32 1.442695, %v27_v5 }
  0x91   :  { %51 = vpow2.f32 %v28_v6 }
  0x94   :  { %v17_v9 = vpop.permute.xlu0 %16 }
  0x95   :  { %vm18_vm1 = vcmp.eq.s32.totalorder %v14_v8, %v17_v9 }
  0x96   :  { %v19_v11 = vsel %vm18_vm1, %v11_v0, 0.0 }
  0x97   :  { %v21_v13 = vsel %vm20_vm0, %v19_v11, 0.0 }
  0x9e   :  { %v52_v10 = vpop.eup %51 }
  0x9f   :  { %v30_v12 = vsel %vm20_vm0, %v52_v10, 0.0 }
  0xa0   :  { %31 = vadd.xlane.f32.xlu1 %v30_v12 }
  0xa4   :  { %22 = vadd.xlane.f32.xlu1 %v21_v13 }
 0x129   :  { %v32_v14 = vpop.xlane.xlu1 %31 }
 0x12a   :  { %53 = vlog2.f32 %v32_v14 }
 0x12d   :  { %v23_v17 = vpop.xlane.xlu1 %22 }
 0x137   :  { %v54_v15 = vpop.eup %53 }
 0x138   :  { %v34_v16 = vmul.f32 0.6931472, %v54_v15 }
 0x13a   :  { %v35_v18 = vadd.f32 %v34_v16, %v26_v4 }
 0x13c   :  { %v36_v19 = vsub.f32 %v35_v18, %v23_v17 }
 0x13e   :  { %v37_v20 = vsub.f32 0.0, %v36_v19 }
 0x140   :  { %v38_v21 = vmul.f32 1.442695, %v37_v20 }
 0x142   :  { %55 = vpow2.f32 %v38_v21 }
 0x14f   :  { %v56_v22 = vpop.eup %55 }
 0x150   :  { %v40_v23 = vsub.f32 1.0, %v56_v22 }
 0x152   :  { %v41_v24 = vmul.f32 0.3, %v40_v23 }
 0x154   :  { %v42_v25 = vmul.f32 %v41_v24, %v36_v19 }
 0x156   :  { %44 = vst.msk [vmem:[%s87_s2] sm:$0xff] %vm43_vm2, %v42_v25 }

</bundles_post_ra>
